<compile_context>
chip_gen: v5e
topology: v5e:2x2
jax: 0.10.0
libtpu: 0.0.40
codegen_flags: <defaults>
</compile_context>

<pallas_src>
import functools
import math

import jax
import jax.numpy as jnp
from jax.experimental import pallas as pl
from jax.experimental.pallas import tpu as pltpu


_LANES = 128
_WHOLE_PATH_MAX_VMEM = 48 << 20   # use whole-sample blocking below this budget
_VMEM_FLOOR = 32 << 20
_VMEM_CEIL = 56 << 20             # stay under v7x's 64 MiB physical VMEM
_DEFAULT_CHUNK_ROWS = 2048        # 2048 * 128 * 4 B = 1 MiB (f32) per chunk


def _mask_of(x, mask_value, mask_type):
    if mask_type == "eq":
        return x == mask_value
    elif mask_type == "lt":
        return x < mask_value
    elif mask_type == "gt":
        return x > mask_value
    elif mask_type == "lte":
        return x <= mask_value
    elif mask_type == "gte":
        return x >= mask_value
    raise Exception("Mask type unknown: {}".format(mask_type))


def _pad_value(mask_value, mask_type):
    # A value guaranteed to be masked out, so padded elements never enter the
    # statistics (and padded outputs are sliced off anyway).
    if mask_type in ("eq", "lte", "gte"):
        return float(mask_value)
    if mask_type == "lt":
        return float(mask_value) - 1.0
    if mask_type == "gt":
        return float(mask_value) + 1.0
    raise Exception("Mask type unknown: {}".format(mask_type))


# --------------------------------------------------------------------------
# Whole-sample path: one grid step per batch sample, block = whole sample.
# --------------------------------------------------------------------------
def _whole_kernel(x_ref, o_ref, *, mask_value, mask_type, mask_fill, eps):
    # native-dtype load, f32 compute, native-dtype store.
    x = x_ref[...].astype(jnp.float32)            # (1, R, 128)
    masked = _mask_of(x, mask_value, mask_type)

    n = jnp.sum(jnp.where(masked, 0.0, 1.0))
    xv = jnp.where(masked, 0.0, x)                # computed once, reused
    s1 = jnp.sum(xv)

    m1 = s1 / n                                   # mean over valid elements
    y = x - m1
    # mean of the mean-subtracted valid values via the identity
    # sum(valid, y) == s1 - n*m1  (saves a full reduction pass; differs from
    # the explicit two-pass only at fp-rounding level).
    m2 = (s1 - n * m1) / n
    d = jnp.where(masked, 0.0, y - m2)
    var = jnp.sum(d * d) / (n - 1.0)              # unbiased, like torch.var
    inv = 1.0 / (jnp.sqrt(var) + eps)             # eps added to std, not var

    fill = x if mask_fill is None else jnp.float32(mask_fill)
    # single fused select: valid -> normalized, masked -> original / mask_fill
    o_ref[...] = jnp.where(masked, fill, y * inv).astype(o_ref.dtype)


# --------------------------------------------------------------------------
# Chunked two-phase path (large samples): phase 1 accumulates per-sample
# {count, sum, sum-of-squares} over row chunks, phase 2 normalizes per chunk.
# --------------------------------------------------------------------------
def _stats_kernel(x_ref, n_ref, s1_ref, s2_ref, *, mask_value, mask_type):
    c = pl.program_id(1)

    @pl.when(c == 0)
    def _init():
        n_ref[...] = jnp.zeros_like(n_ref)
        s1_ref[...] = jnp.zeros_like(s1_ref)
        s2_ref[...] = jnp.zeros_like(s2_ref)

    x = x_ref[...].astype(jnp.float32)            # (1, TR, 128)
    masked = _mask_of(x, mask_value, mask_type)
    xv = jnp.where(masked, 0.0, x)
    ones = jnp.where(masked, 0.0, 1.0)

    # lane-wise partials; the tiny cross-lane reduce happens in the apply pass
    n_ref[...] += jnp.sum(ones, axis=1, keepdims=True)     # (1, 1, 128)
    s1_ref[...] += jnp.sum(xv, axis=1, keepdims=True)
    s2_ref[...] += jnp.sum(xv * xv, axis=1, keepdims=True)


def _apply_kernel(x_ref, n_ref, s1_ref, s2_ref, o_ref, *,
                  mask_value, mask_type, mask_fill, eps):
    x = x_ref[...].astype(jnp.float32)            # (1, TR, 128)
    masked = _mask_of(x, mask_value, mask_type)

    n = jnp.sum(n_ref[...])
    s1 = jnp.sum(s1_ref[...])
    s2 = jnp.sum(s2_ref[...])

    m1 = s1 / n
    m2 = (s1 - n * m1) / n                        # mean of (x - m1) over valid
    mu = m1 + m2
    # unbiased var of the mean-subtracted valid values (one-pass form);
    # clamp to guard against tiny negative values from cancellation.
    var = jnp.maximum((s2 - 2.0 * mu * s1 + n * mu * mu) / (n - 1.0), 0.0)
    inv = 1.0 / (jnp.sqrt(var) + eps)

    y = x - m1
    fill = x if mask_fill is None else jnp.float32(mask_fill)
    o_ref[...] = jnp.where(masked, fill, y * inv).astype(o_ref.dtype)


# --------------------------------------------------------------------------
# Wrapper
# --------------------------------------------------------------------------
def masked_normalize(
    x,
    mask_value=0,
    mask_type="eq",
    mask_fill=None,
    per_channel_mean=True,   # no effect for 4-D NCHW input (see note above)
    per_channel_var=False,   # no effect for 4-D NCHW input
    eps=1e-5,
    chunk_rows=None,         # force the chunked path with this row-chunk size
):
    del per_channel_mean, per_channel_var  # dead branches for 4-D input
    assert jnp.issubdtype(x.dtype, jnp.floating), "MaskedNormalize expects float input"

    orig_shape = x.shape
    dtype = x.dtype
    B = orig_shape[0]
    N = math.prod(orig_shape[1:])
    itemsize = jnp.dtype(dtype).itemsize

    R_full = pl.cdiv(N, _LANES)

    # whole-sample VMEM budget: double-buffered in + out (native dtype) plus
    # a few f32-sized temporaries.
    whole_needed = 4 * R_full * _LANES * itemsize + 6 * R_full * _LANES * 4 + (2 << 20)
    use_chunked = (chunk_rows is not None) or (whole_needed > _WHOLE_PATH_MAX_VMEM)

    if use_chunked:
        tr = _DEFAULT_CHUNK_ROWS if chunk_rows is None else int(chunk_rows)
        tr = max(8, (tr // 8) * 8)                       # sublane alignment
        tr = min(tr, max(8, ((R_full + 7) // 8) * 8))
        R_pad = pl.cdiv(R_full, tr) * tr
    else:
        tr = R_full
        R_pad = R_full

    # Pad the flattened sample to a whole number of (tr, 128) tiles with a
    # guaranteed-masked value (keeps statistics identical).
    pad_val = _pad_value(mask_value, mask_type)
    N_pad = R_pad * _LANES
    xf = x.reshape(B, N)
    if N_pad != N:
        pad = jnp.full((B, N_pad - N), pad_val, dtype=dtype)
        xf = jnp.concatenate([xf, pad], axis=1)
    xf = xf.reshape(B, R_pad, _LANES)

    base_args = dict(mask_value=float(mask_value), mask_type=mask_type)

    if not use_chunked:
        vmem = int(min(max(whole_needed, _VMEM_FLOOR), _VMEM_CEIL))
        out = pl.pallas_call(
            functools.partial(_whole_kernel, mask_fill=mask_fill, eps=float(eps),
                              **base_args),
            out_shape=jax.ShapeDtypeStruct((B, R_pad, _LANES), dtype),
            grid_spec=pltpu.PrefetchScalarGridSpec(
                num_scalar_prefetch=0,
                grid=(B,),
                in_specs=[pl.BlockSpec((1, R_pad, _LANES), lambda b: (b, 0, 0))],
                out_specs=pl.BlockSpec((1, R_pad, _LANES), lambda b: (b, 0, 0)),
            ),
            compiler_params=pltpu.CompilerParams(
                dimension_semantics=("parallel",),
                vmem_limit_bytes=vmem),
        )(xf)
    else:
        nc = R_pad // tr
        chunk_needed = 4 * tr * _LANES * itemsize + 6 * tr * _LANES * 4 + (2 << 20)
        vmem = int(min(max(chunk_needed, _VMEM_FLOOR), _VMEM_CEIL))

        stats_shape = jax.ShapeDtypeStruct((B, 1, _LANES), jnp.float32)
        stat_spec = pl.BlockSpec((1, 1, _LANES), lambda b, c: (b, 0, 0))
        chunk_spec = pl.BlockSpec((1, tr, _LANES), lambda b, c: (b, c, 0))

        n_s, s1_s, s2_s = pl.pallas_call(
            functools.partial(_stats_kernel, **base_args),
            out_shape=(stats_shape, stats_shape, stats_shape),
            grid_spec=pltpu.PrefetchScalarGridSpec(
                num_scalar_prefetch=0,
                grid=(B, nc),
                in_specs=[chunk_spec],
                out_specs=(stat_spec, stat_spec, stat_spec),
            ),
            compiler_params=pltpu.CompilerParams(
                dimension_semantics=("parallel", "arbitrary"),
                vmem_limit_bytes=vmem),
        )(xf)

        out = pl.pallas_call(
            functools.partial(_apply_kernel, mask_fill=mask_fill, eps=float(eps),
                              **base_args),
            out_shape=jax.ShapeDtypeStruct((B, R_pad, _LANES), dtype),
            grid_spec=pltpu.PrefetchScalarGridSpec(
                num_scalar_prefetch=0,
                grid=(B, nc),
                in_specs=[chunk_spec, stat_spec, stat_spec, stat_spec],
                out_specs=chunk_spec,
            ),
            compiler_params=pltpu.CompilerParams(
                dimension_semantics=("parallel", "parallel"),
                vmem_limit_bytes=vmem),
        )(xf, n_s, s1_s, s2_s)

    if N_pad != N:
        out = out.reshape(B, N_pad)[:, :N]
    return out.reshape(orig_shape)


# --------------------------------------------------------------------------
# Pure-JAX reference (same per-batch masked-normalize semantics)
# --------------------------------------------------------------------------
def _reference(x, mask_value=0.0, mask_type="eq", mask_fill=None, eps=1e-5):
    B = x.shape[0]
    xf = x.reshape(B, -1).astype(jnp.float32)
    masked = _mask_of(xf, float(mask_value), mask_type)
    valid = jnp.logical_not(masked)
    n = jnp.sum(valid, axis=1, keepdims=True).astype(jnp.float32)
    m1 = jnp.sum(jnp.where(valid, xf, 0.0), axis=1, keepdims=True) / n
    y = xf - m1
    m2 = jnp.sum(jnp.where(valid, y, 0.0), axis=1, keepdims=True) / n
    var = jnp.sum(jnp.where(valid, (y - m2) ** 2, 0.0), axis=1, keepdims=True) / (n - 1.0)
    out = jnp.where(valid, y / (jnp.sqrt(var) + eps), xf)
    if mask_fill is not None:
        out = jnp.where(masked, mask_fill, out)
    return out.reshape(x.shape)


if __name__ == "__main__":
    key = jax.random.PRNGKey(0)
    k1, k2, k3, k4 = jax.random.split(key, 4)

    # 1) small aligned f32 sample -> whole-sample path
    B, C, H, W = 2, 4, 16, 16
    x1 = jax.random.normal(k1, (B, C, H, W), dtype=jnp.float32)
    x1 = jnp.where(jax.random.uniform(k2, x1.shape) > 0.2, x1, 0.0)
    out1 = jax.block_until_ready(masked_normalize(x1))
    assert out1.shape == x1.shape and out1.dtype == x1.dtype
    assert jnp.max(jnp.abs(out1 - _reference(x1))) < 1e-4

    # 2) chunked two-phase path (forced) on a slightly larger f32 sample
    x2 = jax.random.normal(k3, (2, 4, 16, 32), dtype=jnp.float32)
    x2 = jnp.where(jax.random.uniform(k4, x2.shape) > 0.2, x2, 0.0)
    out2 = jax.block_until_ready(masked_normalize(x2, chunk_rows=8))
    assert jnp.max(jnp.abs(out2 - _reference(x2))) < 1e-4

    # 3) non-128-aligned sample (padding path) with mask_fill
    x3 = jax.random.normal(k1, (2, 3, 10, 10), dtype=jnp.float32)
    x3 = jnp.where(jax.random.uniform(k2, x3.shape) > 0.2, x3, 0.0)
    out3 = jax.block_until_ready(masked_normalize(x3, mask_fill=-1.0))
    assert jnp.max(jnp.abs(out3 - _reference(x3, mask_fill=-1.0))) < 1e-4

    # 4) bf16 input: native-dtype HBM traffic, f32 compute inside the kernel
    x4 = jax.random.normal(k3, (2, 4, 16, 32), dtype=jnp.float32)
    x4 = jnp.where(jax.random.uniform(k4, x4.shape) > 0.2, x4, 0.0).astype(jnp.bfloat16)
    out4 = jax.block_until_ready(masked_normalize(x4))
    assert out4.dtype == jnp.bfloat16
    ref4 = _reference(x4.astype(jnp.float32))
    assert jnp.max(jnp.abs(out4.astype(jnp.float32) - ref4)) < 5e-2

    print("KERNEL_OK")
</pallas_src>

<mosaic_0001>
module attributes {stable_mosaic.version = 11 : i64} {
  func.func @_whole_kernel(%arg0: i32, %arg1: memref<1x8x128xf32, #tpu.memory_space<vmem>>, %arg2: memref<1x8x128xf32, #tpu.memory_space<vmem>>) attributes {dimension_semantics = [#tpu.dimension_semantics<parallel>], iteration_bounds = array<i64: 2>, scalar_prefetch = 0 : i64, scratch_operands = 0 : i64, tpu.core_type = #tpu.core_type<tc>, window_params = [{transform_indices = @transform_0, window_bounds = array<i64: 1, 8, 128>}, {transform_indices = @transform_1, window_bounds = array<i64: 1, 8, 128>}]} {
    %c0 = arith.constant 0 : index
    %c0_0 = arith.constant 0 : index
    %c0_1 = arith.constant 0 : index
    %0 = vector.load %arg1[%c0, %c0_0, %c0_1] : memref<1x8x128xf32, #tpu.memory_space<vmem>>, vector<1x8x128xf32>
    %cst = arith.constant 0.000000e+00 : f32
    %1 = vector.broadcast %cst : f32 to vector<1x8x128xf32>
    %2 = arith.cmpf oeq, %0, %1 : vector<1x8x128xf32>
    %cst_2 = arith.constant 0.000000e+00 : f32
    %cst_3 = arith.constant 1.000000e+00 : f32
    %3 = vector.broadcast %cst_2 : f32 to vector<1x8x128xf32>
    %4 = vector.broadcast %cst_3 : f32 to vector<1x8x128xf32>
    %5 = arith.select %2, %3, %4 : vector<1x8x128xi1>, vector<1x8x128xf32>
    %6 = vector.shape_cast %5 : vector<1x8x128xf32> to vector<1x1x8x128xf32>
    %cst_4 = arith.constant dense<0.000000e+00> : vector<1xf32>
    %7 = vector.multi_reduction <add>, %6, %cst_4 [1, 2, 3] : vector<1x1x8x128xf32> to vector<1xf32>
    %8 = vector.shape_cast %7 : vector<1xf32> to vector<1x1x1x1xf32>
    %9 = vector.extract %8[0, 0, 0, 0] : f32 from vector<1x1x1x1xf32>
    %cst_5 = arith.constant 0.000000e+00 : f32
    %10 = vector.broadcast %cst_5 : f32 to vector<1x8x128xf32>
    %11 = arith.select %2, %10, %0 : vector<1x8x128xi1>, vector<1x8x128xf32>
    %12 = vector.shape_cast %11 : vector<1x8x128xf32> to vector<1x1x8x128xf32>
    %cst_6 = arith.constant dense<0.000000e+00> : vector<1xf32>
    %13 = vector.multi_reduction <add>, %12, %cst_6 [1, 2, 3] : vector<1x1x8x128xf32> to vector<1xf32>
    %14 = vector.shape_cast %13 : vector<1xf32> to vector<1x1x1x1xf32>
    %15 = vector.extract %14[0, 0, 0, 0] : f32 from vector<1x1x1x1xf32>
    %16 = arith.divf %15, %9 : f32
    %17 = vector.broadcast %16 : f32 to vector<1x8x128xf32>
    %18 = arith.subf %0, %17 : vector<1x8x128xf32>
    %19 = arith.mulf %9, %16 : f32
    %20 = arith.subf %15, %19 : f32
    %21 = arith.divf %20, %9 : f32
    %22 = vector.broadcast %21 : f32 to vector<1x8x128xf32>
    %23 = arith.subf %18, %22 : vector<1x8x128xf32>
    %cst_7 = arith.constant 0.000000e+00 : f32
    %24 = vector.broadcast %cst_7 : f32 to vector<1x8x128xf32>
    %25 = arith.select %2, %24, %23 : vector<1x8x128xi1>, vector<1x8x128xf32>
    %26 = arith.mulf %25, %25 : vector<1x8x128xf32>
    %27 = vector.shape_cast %26 : vector<1x8x128xf32> to vector<1x1x8x128xf32>
    %cst_8 = arith.constant dense<0.000000e+00> : vector<1xf32>
    %28 = vector.multi_reduction <add>, %27, %cst_8 [1, 2, 3] : vector<1x1x8x128xf32> to vector<1xf32>
    %29 = vector.shape_cast %28 : vector<1xf32> to vector<1x1x1x1xf32>
    %30 = vector.extract %29[0, 0, 0, 0] : f32 from vector<1x1x1x1xf32>
    %cst_9 = arith.constant 1.000000e+00 : f32
    %31 = arith.subf %9, %cst_9 : f32
    %32 = arith.divf %30, %31 : f32
    %33 = math.sqrt %32 : f32
    %cst_10 = arith.constant 9.99999974E-6 : f32
    %34 = arith.addf %33, %cst_10 : f32
    %cst_11 = arith.constant 1.000000e+00 : f32
    %35 = arith.divf %cst_11, %34 : f32
    %36 = vector.broadcast %35 : f32 to vector<1x8x128xf32>
    %37 = arith.mulf %18, %36 : vector<1x8x128xf32>
    %38 = arith.select %2, %0, %37 : vector<1x8x128xi1>, vector<1x8x128xf32>
    %c0_12 = arith.constant 0 : index
    %c0_13 = arith.constant 0 : index
    %c0_14 = arith.constant 0 : index
    %39 = vector.load %arg2[%c0_12, %c0_13, %c0_14] : memref<1x8x128xf32, #tpu.memory_space<vmem>>, vector<1x8x128xf32>
    tpu.vector_store %arg2[%c0_12, %c0_13, %c0_14], %38 {strides = array<i32>} : memref<1x8x128xf32, #tpu.memory_space<vmem>>, vector<1x8x128xf32>,
    return
  }
  func.func @transform_0(%arg0: i32) -> (i32, i32, i32) {
    %c0_i32 = arith.constant 0 : i32
    %c0_i32_0 = arith.constant 0 : i32
    %c0_i32_1 = arith.constant 0 : i32
    return %arg0, %c0_i32, %c0_i32_0 : i32, i32, i32
  }
  func.func @transform_1(%arg0: i32) -> (i32, i32, i32) {
    %c0_i32 = arith.constant 0 : i32
    %c0_i32_0 = arith.constant 0 : i32
    %c0_i32_1 = arith.constant 0 : i32
    return %arg0, %c0_i32, %c0_i32_0 : i32, i32, i32
  }
}

</mosaic_0001>

<bundles_post_ra>
// kernel: tpu_custom_call.1
= control target key start
LH: loop header
LB: loop body
LE: loop exit
PB: predicated region body
PF: predicated region fallthrough
CT: control target
= control target key end

     0   :  { %6 = vsyncpa [#allocation3], 0  ;;  %s691_s0 = inlined_call_operand.hbm [shape: f32[2,8,128], index: 0, kind: input, shape index: {}]   ;;  %s692_s1 = inlined_call_operand.hbm [shape: f32[2,8,128], index: 1, kind: output, shape index: {}]  }
   0x1   :  { %8 = vsyncpa [#allocation3 + $0x1], 0 }
   0x2   :  { %9 = vsyncpa [#allocation4], 0 }
   0x3   :  { %11 = vsyncpa [#allocation4 + $0x1], 0  ;;  %s537_s6 = smov 0   ;;  %s539_s7 = smov 0  }
   0x4   :  { %s541_s8 = smov 0   ;;  %s543_s9 = smov 0  }
   0x5 LB: > { %s558_s10 = sadd.s32 4294967295, %s524_s9   ;;  %s346_s11 = sadd.s32 4294967294, %s524_s9   ;;  %s524_s9 = sphi %s543_s9, %s702_s9   ;;  %s520_s8 = sphi %s541_s8, %s701_s8   ;;  %s516_s7 = sphi %s539_s7, %s700_s7   ;;  %s512_s6 = sphi %s537_s6, %s699_s6  }
   0x6   : > { %s562_s12 = sadd.s32 1, %s524_s9   ;;  %s24_s13 = sadd.s32 1, %s520_s8 }
   0x7   : > { %s21_s14 = ssub.s32 %s524_s9, %s562_s12  ;;  %p31_p0 = scmp.ne.s32.totalorder %s520_s8, %s516_s7 }
   0x8   : > { %p22_p1 = scmp.eq.s32.totalorder %s21_s14, 0  ;;  %p32_p2 = scmp.eq.s32.totalorder %s524_s9, 0 }
   0x9   : > { %p37_p3 = scmp.ne.s32.totalorder %s516_s7, %s512_s6  ;;  %p38_p4 = scmp.eq.s32.totalorder %s558_s10, 0 }
   0xa   : > { %s574_s15 = scalar_select %p22_p1, %s520_s8, %s24_s13  }
   0xb   : > { %p576_p5 = por %p32_p2, %p31_p0  ;;  %p580_p6 = por %p38_p4, %p37_p3 }
   0xc   : > { %p61_p7 = scmp.eq.s32.totalorder %s558_s10, 1  ;;  %p67_p8 = scmp.eq.s32.totalorder %s346_s11, 1 }
   0xd   : > { %p385_p10 = scmp.lt.s32.totalorder %s524_s9, 2  ;;  %s87_s20 = sand.u32 1, %s520_s8  }
   0xe   : > { %p587_p11 = por %p61_p7, %p31_p0  ;;  %p591_p12 = por %p67_p8, %p37_p3 }
   0xf   : > { %s350_s21 = sshll.u32 %s524_s9, 3  ;;  %s349_s22 = sshll.u32 %s87_s20, 3 }
  0x10   : > { %s95_s25 = scalar_lea.hbm %s691_s0, %s350_s21  ;;  %s91_s27 = scalar_lea.vmem [#allocation2], %s349_s22 }
  0x11   : > { %s97_s26 = sshll.u32 %s95_s25, 4  ;;  %s99_s28 = sshll.u32 %s91_s27, 4  ;;  %s98_s26 = int_to_ptr.hbm [resolvable:$true] %s97_s26  ;;  %s100_s28 = int_to_ptr.vmem [resolvable:$true] %s99_s28 }
  0x12   : > { %p602_p13 = pnand %p385_p10, %p576_p5  ;;  %p351_p0 = scmp.ge.s32.totalorder %s524_s9, 1 }
  0x13   : > { %p104_p1 = scmp.lt.s32.totalorder %s524_s9, 3  ;;  %s88_s30 = scalar_lea.sflag [#allocation3], %s87_s20 }
  0x14   : > { %s428_s2 = sshra.s32 %s98_s26, 4  ;;  %p432_p3 = pneg %p602_p13  ;;  %s429_s2 = int_to_ptr.hbm [resolvable:$true] %s428_s2 }
  0x15   : > { %s430_s3 = scalar_lea.hbm %s429_s2, 8  ;;  %s435_s11 = scalar_lea.hbm %s691_s0, 16 }
  0x16   : > { %p431_p2 = scmp.ne.s32.totalorder %s429_s2, %s430_s3  ;;  %p436_p5 = scmp.lt.s32.totalorder %s429_s2, %s691_s0 }
  0x17   : > { %p437_p8 = scmp.lt.s32.totalorder %s435_s11, %s430_s3 }
  0x18   : > { %p433_p4 = pnand %p432_p3, %p431_p2 }
  0x19   : > { %p438_p10 = por %p437_p8, %p436_p5 }
  0x1a   : > { %p434_p7 = pneg %p433_p4 }
  0x1c   : > { %p439_p9 = pnand %p438_p10, %p434_p7 }
  0x1e   : > { %442 = shalt.err (!%p439_p9)
}
  0x1f   : > { %380 = dma.hbm_to_vmem [thread:$0]  (!%p602_p13), %s98_s26, 128, %s100_s28, %s88_s30  }
  0x20   : > { %p105_p2 = pnand %p351_p0, %p104_p1 }
  0x21   : > { %s623_s16 = sand.u32 (!%p105_p2), 1, %s516_s7  }
  0x22   : > { %108 = sbr.rel (%p105_p2) target bundleno = 633 (0x279), region = 24  ;;  %s352_s20 = sshll.u32 (!%p105_p2), %s623_s16, 3 }
  0x23   : > { %s111_s21 = scalar_lea.sflag (!%p105_p2), [#allocation3], %s623_s16  ;;  %s114_s22 = scalar_lea.vmem (!%p105_p2), [#allocation2], %s352_s20 }
  0x27   : > { %503 = dma.done.wait (%p580_p6), %s111_s21, 128  }
  0x28   : > { %505 = vsyncadd (%p580_p6), %s111_s21, 4294967168  ;;  %v633_v0 = vld [vmem:[%s114_s22] sm:$0xff]  ;;  %v526_v1 = vmov 1.0   ;;  %s356_s11 = sshll.u32 %s558_s10, 3  ;;  %s133_s22 = scalar_lea.vmem [#allocation5], %s352_s20 }
  0x29   : > { %vm135_vm0 = vcmp.eq.f32.partialorder %v633_v0, 0.0  ;;  %s271_s21 = scalar_lea.hbm %s692_s1, %s356_s11  ;;  %s261_s10 = scalar_lea.sflag [#allocation4], %s623_s16 }
  0x2a   : > { %v136_v2 = vsel %vm135_vm0, 0.0, %v526_v1  ;;  %v146_v3 = vsel %vm135_vm0, 0.0, %v633_v0 }
  0x2b   : > { %137 = vadd.xlane.f32.xlu0 %v136_v2 }
  0x33   : > { %147 = vadd.xlane.f32.xlu0 %v146_v3 }
  0x9e   : > { %v138_v4 = vpop.xlane.xlu0 %137 }
  0x9f   : > { %v139_v5 = vrot.slane %v138_v4, 4 }
  0xa1   : > { %v140_v6 = vadd.f32 %v139_v5, %v138_v4 }
  0xa3   : > { %v141_v7 = vrot.slane %v140_v6, 2 }
  0xa5   : > { %v142_v8 = vadd.f32 %v141_v7, %v140_v6 }
  0xa6   : > { %v148_v11 = vpop.xlane.xlu0 %147 }
  0xa7   : > { %v143_v9 = vrot.slane %v142_v8, 1  ;;  %v149_v12 = vrot.slane %v148_v11, 4 }
  0xa9   : > { %v144_v10 = vadd.f32 %v143_v9, %v142_v8  ;;  %v150_v13 = vadd.f32 %v149_v12, %v148_v11 }
  0xab   : > { %359 = vpush %v144_v10  ;;  %v151_v14 = vrot.slane %v150_v13, 2 }
  0xad   : > { %v152_v15 = vadd.f32 %v151_v14, %v150_v13 }
  0xaf   : > { %v153_v16 = vrot.slane %v152_v15, 1 }
  0xb1   : > { %v154_v17 = vadd.f32 %v153_v16, %v152_v15 }
  0xb3   : > { %361 = vpush %v154_v17 }
  0xdc   : > { %s641_s17 = spop %359 }
  0xdd   : > { %v156_v18 = vstv %s641_s17  ;;  %s354_s29 = sadd.f32 -1.0, %s641_s17 }
  0xde   : > { %420 = vrcp.f32 %v156_v18  ;;  %v168_v22 = vand.u32 2147483648, %v156_v18  ;;  %v166_v24 = vand.u32 2147483647, %v156_v18  ;;  %vm162_vm2 = vweird.f32 %v156_v18 }
  0xdf   : > { %v208_v35 = vstv %s354_s29 }
  0xe0   : > { %v169_v26 = vor.u32 1.1754944e-38, %v168_v22  ;;  %vm167_vm4 = vcmp.eq.f32.partialorder %v166_v24, 8.507059e+37  ;;  %422 = vrcp.f32 %v208_v35  ;;  %v220_v46 = vand.u32 2147483648, %v208_v35 }
  0xe1   : > { %vm214_vm6 = vweird.f32 %v208_v35  ;;  %v218_v47 = vand.u32 2147483647, %v208_v35 }
  0xe2   : > { %v221_v51 = vor.u32 1.1754944e-38, %v220_v46 }
  0xe3   : > { %vm219_vm8 = vcmp.eq.f32.partialorder %v218_v47, 8.507059e+37 }
  0xe4   : > { %v421_v19 = vpop.eup %420  ;;  %s362_s23 = spop %361 }
  0xe5   : > { %v158_v20 = vmul.f32 %v421_v19, %v156_v18  ;;  %vm163_vm1 = vweird.f32 %v421_v19 }
  0xe6   : > { %vm164_vm3 = vmor %vm162_vm2, %vm163_vm1  ;;  %v423_v36 = vpop.eup %422 }
  0xe7   : > { %v159_v21 = vsub.f32 1.0, %v158_v20  ;;  %v210_v37 = vmul.f32 %v423_v36, %v208_v35  ;;  %vm215_vm5 = vweird.f32 %v423_v36 }
  0xe8   : > { %vm216_vm7 = vmor %vm214_vm6, %vm215_vm5 }
  0xe9   : > { %v160_v23 = vmul.f32 %v421_v19, %v159_v21  ;;  %v211_v38 = vsub.f32 1.0, %v210_v37 }
  0xeb   : > { %v161_v25 = vadd.f32 %v421_v19, %v160_v23  ;;  %v212_v41 = vmul.f32 %v423_v36, %v211_v38 }
  0xed   : > { %v165_v27 = vsel %vm164_vm3, %v421_v19, %v161_v25  ;;  %v213_v44 = vadd.f32 %v423_v36, %v212_v41 }
  0xee   : > { %v170_v28 = vsel %vm167_vm4, %v169_v26, %v165_v27 }
  0xef   : > { %363 = vpush %v170_v28  ;;  %v217_v49 = vsel %vm216_vm7, %v423_v36, %v213_v44 }
  0xf0   : > { %v222_v52 = vsel %vm219_vm8, %v221_v51, %v217_v49 }
 0x120   : > { %s364_s24 = spop %363 }
 0x121   : > { %s172_s25 = smul.f32 %s364_s24, %s362_s23 }
 0x123   : > { %s175_s26 = smul.f32 %s641_s17, %s172_s25  ;;  %v173_v29 = vstv %s172_s25  ;;  %s273_s17 = sshll.u32 %s133_s22, 4  ;;  %s274_s17 = int_to_ptr.vmem [resolvable:$true] %s273_s17 }
 0x124   : > { %v646_v30 = vsub.f32 %v633_v0, %v173_v29 }
 0x125   : > { %s176_s27 = ssub.f32 %s362_s23, %s175_s26 }
 0x127   : > { %s193_s28 = smul.f32 %s364_s24, %s176_s27  ;;  %s275_s24 = sshll.u32 %s271_s21, 4  ;;  %s276_s24 = int_to_ptr.hbm [resolvable:$true] %s275_s24 }
 0x128   : > { %s472_s25 = sshra.s32 %s276_s24, 4  ;;  %s473_s25 = int_to_ptr.hbm [resolvable:$true] %s472_s25 }
 0x129   : > { %v194_v31 = vstv %s193_s28  ;;  %s474_s26 = scalar_lea.hbm %s473_s25, 8  ;;  %s478_s28 = scalar_lea.hbm %s692_s1, 16 }
 0x12a   : > { %v195_v32 = vsub.f32 %v646_v30, %v194_v31  ;;  %p475_p6 = scmp.ne.s32.totalorder %s473_s25, %s474_s26  ;;  %p479_p0 = scmp.lt.s32.totalorder %s473_s25, %s692_s1 }
 0x12b   : > { %p480_p1 = scmp.lt.s32.totalorder %s478_s28, %s474_s26 }
 0x12c   : > { %v196_v33 = vsel %vm135_vm0, 0.0, %v195_v32  ;;  %p476_p9 = pnand %p475_p6, %p587_p11 }
 0x12d   : > { %v197_v34 = vmul.f32 %v196_v33, %v196_v33  ;;  %p481_p3 = por %p480_p1, %p479_p0 }
 0x12e   : > { %p477_p13 = pneg %p476_p9 }
 0x12f   : > { %198 = vadd.xlane.f32.xlu1 %v197_v34 }
 0x130   : > { %p482_p4 = pnand %p481_p3, %p477_p13 }
 0x1a2   : > { %v199_v39 = vpop.xlane.xlu1 %198 }
 0x1a3   : > { %v200_v40 = vrot.slane %v199_v39, 4 }
 0x1a5   : > { %v201_v42 = vadd.f32 %v200_v40, %v199_v39 }
 0x1a7   : > { %v202_v43 = vrot.slane %v201_v42, 2 }
 0x1a9   : > { %v203_v45 = vadd.f32 %v202_v43, %v201_v42 }
 0x1ab   : > { %v204_v48 = vrot.slane %v203_v45, 1 }
 0x1ad   : > { %v205_v50 = vadd.f32 %v204_v48, %v203_v45 }
 0x1af   : > { %365 = vpush %v205_v50 }
 0x1b0   : > { %367 = vpush %v222_v52 }
 0x1e0   : > { %s366_s30 = spop %365 }
 0x1e1   : > { %s368_s2 = spop %367 }
 0x1e2   : > { %s224_s3 = smul.f32 %s368_s2, %s366_s30 }
 0x1e4   : > { %v225_v53 = vstv %s224_s3 }
 0x1e5   : > { %424 = vrsqrt.f32 %v225_v53  ;;  %vm233_vm9 = vcmp.eq.f32.partialorder %v225_v53, inf  ;;  %v236_v61 = vand.u32 2147483648, %v225_v53  ;;  %vm235_vm10 = vcmp.eq.f32.partialorder %v225_v53, 0.0 }
 0x1eb   : > { %v425_v54 = vpop.eup %424 }
 0x1ec   : > { %v227_v55 = vmul.f32 %v425_v54, %v225_v53 }
 0x1ee   : > { %v228_v56 = vmul.f32 %v425_v54, %v227_v55 }
 0x1f0   : > { %v229_v57 = vmul.f32 0.5, %v228_v56 }
 0x1f2   : > { %v230_v58 = vsub.f32 1.5, %v229_v57 }
 0x1f4   : > { %v231_v59 = vmul.f32 %v425_v54, %v230_v58 }
 0x1f6   : > { %v232_v60 = vmul.f32 %v231_v59, %v225_v53 }
 0x1f8   : > { %v234_v62 = vsel %vm233_vm9, %v225_v53, %v232_v60 }
 0x1f9   : > { %v237_v63 = vsel %vm235_vm10, %v236_v61, %v234_v62 }
 0x1fa   : > { %369 = vpush %v237_v63 }
 0x22b   : > { %s370_s4 = spop %369 }
 0x22c   : > { %s239_s5 = sadd.f32 1e-05, %s370_s4 }
 0x22e   : > { %v240_v1 = vstv %s239_s5 }
 0x22f   : > { %426 = vrcp.f32 %v240_v1  ;;  %v252_v5 = vand.u32 2147483648, %v240_v1  ;;  %v250_v7 = vand.u32 2147483647, %v240_v1  ;;  %vm246_vm12 = vweird.f32 %v240_v1 }
 0x231   : > { %v253_v9 = vor.u32 1.1754944e-38, %v252_v5  ;;  %vm251_vm14 = vcmp.eq.f32.partialorder %v250_v7, 8.507059e+37 }
 0x235   : > { %v427_v2 = vpop.eup %426 }
 0x236   : > { %v242_v3 = vmul.f32 %v427_v2, %v240_v1  ;;  %vm247_vm11 = vweird.f32 %v427_v2 }
 0x237   : > { %vm248_vm13 = vmor %vm246_vm12, %vm247_vm11 }
 0x238   : > { %v243_v4 = vsub.f32 1.0, %v242_v3 }
 0x23a   : > { %v244_v6 = vmul.f32 %v427_v2, %v243_v4 }
 0x23c   : > { %v245_v8 = vadd.f32 %v427_v2, %v244_v6 }
 0x23e   : > { %v249_v10 = vsel %vm248_vm13, %v427_v2, %v245_v8 }
 0x23f   : > { %v254_v11 = vsel %vm251_vm14, %v253_v9, %v249_v10 }
 0x240   : > { %371 = vpush %v254_v11 }
 0x271   : > { %s372_s23 = spop %371 }
 0x272   : > { %v256_v12 = vstv %s372_s23 }
 0x273   : > { %v257_v13 = vmul.f32 %v256_v12, %v646_v30 }
 0x275   : > { %v258_v14 = vsel %vm135_vm0, %v633_v0, %v257_v13 }
 0x276   : > { %259 = vst [vmem:[%s133_s22] sm:$0xff] %v258_v14 }
 0x277   : > { %485 = shalt.err (!%p482_p4)
}
 0x278   : > { %375 = dma.vmem_to_hbm [thread:$0]  (%p587_p11), %s274_s17, 128, %s276_s24, %s261_s10  }
 0x279 PF: > { %s287_s16 = sand.u32 1, %s512_s6   ;;  %p698_p7 = scmp.ge.s32.totalorder %s524_s9, 2 }
 0x27a   : > { %s288_s2 = scalar_lea.sflag [#allocation4], %s287_s16 }
 0x27b   : > { %p382_p5 = pnand %p698_p7, %p591_p12 }
 0x27d   : > { %p383_p8 = pneg %p382_p5 }
 0x27f   : > { %507 = dma.done.wait (%p383_p8), %s288_s2, 128  }
 0x280   : > { %509 = vsyncadd (%p383_p8), %s288_s2, 4294967168  ;;  %p14_p10 = scmp.ge.s32.totalorder %s562_s12, 4   ;;  %s699_s6 = smov %s516_s7 }
 0x281   : > { %s700_s7 = smov %s520_s8  ;;  %s701_s8 = smov %s574_s15 }
 0x282   : > { %s702_s9 = smov %s562_s12  ;;  %16 = sbr.rel (!%p14_p10) target bundleno = 5 (0x5), region = 69 }
 0x287   :  { %294 = vsyncpa [#allocation3], 1 }
 0x288   :  { %296 = vsyncpa [#allocation3 + $0x1], 1 }
 0x289   :  { %297 = vsyncpa [#allocation4], 1 }
 0x28a   :  { %299 = vsyncpa [#allocation4 + $0x1], 1 }

</bundles_post_ra>
